<compile_context>
chip_gen: v7x
topology: tpu7x:2x2x1
jax: 0.10.0
libtpu: 0.0.40
codegen_flags: <defaults>
</compile_context>

<pallas_src>
import numpy as np
import jax
import jax.numpy as jnp
from jax.experimental import pallas as pl
from jax.experimental.pallas import tpu as pltpu


# ---------------------------------------------------------------------------
# Pallas kernel: 3 matmuls (MXU) + 2 tanh + sigmoid (EUP).  No VALU/XLU hot work.
# ---------------------------------------------------------------------------
def cnn_kernel(x_ref, m1_ref, m2_ref, wl_ref, bl_ref, cb_ref, o_ref):
    x = x_ref[...]                                                   # (TB, D) f32

    # conv1 (k=3, pad=1) + AvgPool1d(4) folded into M1; bias commutes with the mean.
    h1 = jnp.tanh(jnp.dot(x, m1_ref[...],
                          preferred_element_type=jnp.float32) + cb_ref[0])

    # dilated conv2 (k=2, pad=1, dil=2) + AvgPool1d(4) folded into M2.
    h2 = jnp.tanh(jnp.dot(h1, m2_ref[...],
                          preferred_element_type=jnp.float32) + cb_ref[1])

    # squeeze() is implicit (channel dim already dropped); linear + sigmoid.
    z = jnp.dot(h2, wl_ref[...], preferred_element_type=jnp.float32) + bl_ref[...]
    o_ref[...] = jax.nn.sigmoid(z)


# ---------------------------------------------------------------------------
# Host-side constant construction (folds conv into the pooling matmul)
# ---------------------------------------------------------------------------
def _avgpool_matrix(n, k):
    # P[j, p] = 1/k if j // k == p else 0   (AvgPool1d(k), stride k)
    return jnp.asarray(np.kron(np.eye(n // k), np.ones((k, 1)) / k), dtype=jnp.float32)


def _fold_conv1_pool(c1w, D):
    # Conv1d(k=3, pad=1, dil=1): y[i] = w0*x[i-1] + w1*x[i] + w2*x[i+1]
    w = c1w.reshape(3).astype(jnp.float32)
    C1 = w[0] * jnp.eye(D, k=1) + w[1] * jnp.eye(D) + w[2] * jnp.eye(D, k=-1)
    return (C1 @ _avgpool_matrix(D, 4)).astype(jnp.float32)          # (D, D/4)


def _fold_conv2_pool(c2w, L):
    # Conv1d(k=2, pad=1, dil=2): y[i] = w0*h[i-1] + w1*h[i+1]
    w = c2w.reshape(2).astype(jnp.float32)
    C2 = w[0] * jnp.eye(L, k=1) + w[1] * jnp.eye(L, k=-1)
    return (C2 @ _avgpool_matrix(L, 4)).astype(jnp.float32)          # (L, L/4)


def _pick_batch_tile(B, requested=None):
    """Largest multiple-of-8 divisor of B that is <=256, preferring >=2 grid steps."""
    def legal(tb):
        return tb == B or (B % tb == 0 and tb % 8 == 0)
    if requested is not None and legal(requested):
        return requested                                # illegal requests -> auto
    best = None
    for tb in range(8, min(256, B // 2) + 1, 8):        # prefer >= 2 grid steps (v7x)
        if B % tb == 0:
            best = tb
    if best is None:
        for tb in range(8, min(256, B) + 1, 8):
            if B % tb == 0:
                best = tb
    return best if best is not None else B              # full-extent block fallback


# ---------------------------------------------------------------------------
# Wrapper
# ---------------------------------------------------------------------------
def cnn_forward(x_ncl, params, *, batch_tile=None):
    B, c_in, D = x_ncl.shape
    assert c_in == 1, "CNNNet uses single-channel Conv1d"
    assert D % 16 == 0
    D4, D16 = D // 4, D // 16

    x2d = x_ncl[:, 0, :].astype(jnp.float32)                          # (B, D)
    m1 = _fold_conv1_pool(params["conv1_w"], D)                       # (D, D/4)
    m2 = _fold_conv2_pool(params["conv2_w"], D4)                      # (D/4, D/16)
    wl_t = params["lin_w"].T.astype(jnp.float32)                      # (D/16, C)
    bl = params["lin_b"].reshape(1, -1).astype(jnp.float32)           # (1, C)
    cb = jnp.concatenate([params["conv1_b"].reshape(-1),
                          params["conv2_b"].reshape(-1)]).astype(jnp.float32)  # (2,) SMEM
    C = bl.shape[-1]

    TB = _pick_batch_tile(B, batch_tile)
    grid = (B // TB,)
    multi_step = grid[0] > 1

    def const_spec(shape):
        idx = lambda i: tuple(0 for _ in shape)
        if multi_step:
            # Grid-invariant constants: single-buffer, double-buffering is VMEM waste.
            return pl.BlockSpec(shape, idx, pipeline_mode=pl.Buffered(1))
        return pl.BlockSpec(shape, idx)

    # Scoped-VMEM budget: double-buffered x/out tiles + constants, 2x headroom.
    const_bytes = 4 * (D * D4 + D4 * D16 + D16 * C + C)
    tile_bytes = 4 * TB * (D + C)
    vmem_limit = int(min(max(2 * (2 * tile_bytes + 2 * const_bytes), 32 * 1024 * 1024),
                         64 * 1024 * 1024))   # stay within v7x physical VMEM

    return pl.pallas_call(
        cnn_kernel,
        out_shape=jax.ShapeDtypeStruct((B, C), jnp.float32),
        grid=grid,
        in_specs=[
            pl.BlockSpec((TB, D), lambda i: (i, 0)),                  # x, batch-tiled
            const_spec((D, D4)),                                      # M1 (conv1+pool1)
            const_spec((D4, D16)),                                    # M2 (conv2+pool2)
            const_spec((D16, C)),                                     # linear weight^T
            const_spec((1, C)),                                       # linear bias
            pl.BlockSpec(memory_space=pltpu.MemorySpace.SMEM),        # conv biases (2,)
        ],
        out_specs=pl.BlockSpec((TB, C), lambda i: (i, 0)),
        compiler_params=pltpu.CompilerParams(
            dimension_semantics=("parallel",),
            vmem_limit_bytes=vmem_limit),
    )(x2d, m1, m2, wl_t, bl, cb)


# ---------------------------------------------------------------------------
# Pure-numpy reference (mirrors the PyTorch forward exactly, float64)
# ---------------------------------------------------------------------------
def ref_forward_np(x_ncl, params):
    x = np.asarray(x_ncl, np.float64)[:, 0, :]                        # (B, D)
    w1 = np.asarray(params["conv1_w"], np.float64).reshape(3)
    b1 = float(np.asarray(params["conv1_b"]).reshape(-1)[0])
    w2 = np.asarray(params["conv2_w"], np.float64).reshape(2)
    b2 = float(np.asarray(params["conv2_b"]).reshape(-1)[0])
    W = np.asarray(params["lin_w"], np.float64)                       # (C, D/16)
    bl = np.asarray(params["lin_b"], np.float64)                      # (C,)

    B, D = x.shape
    xp = np.pad(x, ((0, 0), (1, 1)))
    # conv1: k=3, pad=1 -> y[i] = w0*x[i-1] + w1*x[i] + w2*x[i+1] + b1
    y1 = w1[0] * xp[:, 0:D] + w1[1] * xp[:, 1:D + 1] + w1[2] * xp[:, 2:D + 2] + b1
    h1 = np.tanh(y1.reshape(B, D // 4, 4).mean(-1))                   # AvgPool1d(4)+Tanh

    L = D // 4
    hp = np.pad(h1, ((0, 0), (1, 1)))
    # conv2: k=2, pad=1, dil=2 -> y[i] = w0*h[i-1] + w1*h[i+1] + b2
    y2 = w2[0] * hp[:, 0:L] + w2[1] * hp[:, 2:L + 2] + b2
    h2 = np.tanh(y2.reshape(B, L // 4, 4).mean(-1))                   # AvgPool1d(4)+Tanh

    z = h2 @ W.T + bl                                                  # squeeze() + Linear
    return 1.0 / (1.0 + np.exp(-z))                                    # Sigmoid


# ---------------------------------------------------------------------------
if __name__ == "__main__":
    # args.d = 64 (input sequence length), args.c = 4 (output classes), batch = 2
    B, D, C = 2, 64, 4

    key = jax.random.PRNGKey(0)
    kx, k1, k2, k3, k4, k5, k6 = jax.random.split(key, 7)

    params = {
        "conv1_w": 0.5 * jax.random.normal(k1, (1, 1, 3), jnp.float32),
        "conv1_b": 0.1 * jax.random.normal(k2, (1,), jnp.float32),
        "conv2_w": 0.5 * jax.random.normal(k3, (1, 1, 2), jnp.float32),
        "conv2_b": 0.1 * jax.random.normal(k4, (1,), jnp.float32),
        "lin_w":   0.3 * jax.random.normal(k5, (C, D // 16), jnp.float32),
        "lin_b":   0.1 * jax.random.normal(k6, (C,), jnp.float32),
    }

    x = jax.random.normal(kx, (B, 1, D), jnp.float32)   # PyTorch NCL input

    out = jax.block_until_ready(cnn_forward(x, params))
    expected = ref_forward_np(np.asarray(x), params)

    # Tolerance covers MXU f32 multi-pass rounding in the fused conv/pool matmuls
    # vs the float64 host reference (outputs are sigmoid values in (0, 1)).
    np.testing.assert_allclose(np.asarray(out, np.float64), expected,
                               rtol=2e-3, atol=2e-3)

    assert out.shape == (B, C)
    print("KERNEL_OK")
</pallas_src>

<mosaic_0001>
module attributes {stable_mosaic.version = 11 : i64} {
  func.func @cnn_kernel(%arg0: i32, %arg1: memref<2x64xf32, #tpu.memory_space<vmem>>, %arg2: memref<64x16xf32, #tpu.memory_space<vmem>>, %arg3: memref<16x4xf32, #tpu.memory_space<vmem>>, %arg4: memref<4x4xf32, #tpu.memory_space<vmem>>, %arg5: memref<1x4xf32, #tpu.memory_space<vmem>>, %arg6: memref<2xf32, #tpu.memory_space<smem>>, %arg7: memref<2x4xf32, #tpu.memory_space<vmem>>) attributes {dimension_semantics = [#tpu.dimension_semantics<parallel>], iteration_bounds = array<i64: 1>, scalar_prefetch = 0 : i64, scratch_operands = 0 : i64, tpu.core_type = #tpu.core_type<tc>, window_params = [{transform_indices = @transform_0, window_bounds = array<i64: 2, 64>}, {pipeline_mode = #tpu.pipeline_mode<synchronous>, transform_indices = @transform_1, window_bounds = array<i64: 64, 16>}, {pipeline_mode = #tpu.pipeline_mode<synchronous>, transform_indices = @transform_2, window_bounds = array<i64: 16, 4>}, {pipeline_mode = #tpu.pipeline_mode<synchronous>, transform_indices = @transform_3, window_bounds = array<i64: 4, 4>}, {pipeline_mode = #tpu.pipeline_mode<synchronous>, transform_indices = @transform_4, window_bounds = array<i64: 1, 4>}, {transform_indices = @transform_5, window_bounds = array<i64: 2>}, {transform_indices = @transform_6, window_bounds = array<i64: 2, 4>}]} {
    %c0 = arith.constant 0 : index
    %c0_0 = arith.constant 0 : index
    %0 = vector.load %arg1[%c0, %c0_0] : memref<2x64xf32, #tpu.memory_space<vmem>>, vector<2x64xf32>
    %c0_1 = arith.constant 0 : index
    %c0_2 = arith.constant 0 : index
    %1 = vector.load %arg2[%c0_1, %c0_2] : memref<64x16xf32, #tpu.memory_space<vmem>>, vector<64x16xf32>
    %cst = arith.constant dense<0.000000e+00> : vector<2x16xf32>
    %2 = tpu.matmul %0, %1, %cst {dimension_numbers = #tpu.dot_dimension_numbers<[1], [0], [0], [1], [0, 0, 1, 1], [], []>} : vector<2x64xf32>, vector<64x16xf32>, vector<2x16xf32> -> vector<2x16xf32>
    %c0_3 = arith.constant 0 : index
    %3 = memref.load %arg6[%c0_3] : memref<2xf32, #tpu.memory_space<smem>>
    %4 = vector.broadcast %3 : f32 to vector<2x16xf32>
    %5 = arith.addf %2, %4 : vector<2x16xf32>
    %6 = math.tanh %5 : vector<2x16xf32>
    %c0_4 = arith.constant 0 : index
    %c0_5 = arith.constant 0 : index
    %7 = vector.load %arg3[%c0_4, %c0_5] : memref<16x4xf32, #tpu.memory_space<vmem>>, vector<16x4xf32>
    %cst_6 = arith.constant dense<0.000000e+00> : vector<2x4xf32>
    %8 = tpu.matmul %6, %7, %cst_6 {dimension_numbers = #tpu.dot_dimension_numbers<[1], [0], [0], [1], [0, 0, 1, 1], [], []>} : vector<2x16xf32>, vector<16x4xf32>, vector<2x4xf32> -> vector<2x4xf32>
    %c1 = arith.constant 1 : index
    %9 = memref.load %arg6[%c1] : memref<2xf32, #tpu.memory_space<smem>>
    %10 = vector.broadcast %9 : f32 to vector<2x4xf32>
    %11 = arith.addf %8, %10 : vector<2x4xf32>
    %12 = math.tanh %11 : vector<2x4xf32>
    %c0_7 = arith.constant 0 : index
    %c0_8 = arith.constant 0 : index
    %13 = vector.load %arg4[%c0_7, %c0_8] : memref<4x4xf32, #tpu.memory_space<vmem>>, vector<4x4xf32>
    %cst_9 = arith.constant dense<0.000000e+00> : vector<2x4xf32>
    %14 = tpu.matmul %12, %13, %cst_9 {dimension_numbers = #tpu.dot_dimension_numbers<[1], [0], [0], [1], [0, 0, 1, 1], [], []>} : vector<2x4xf32>, vector<4x4xf32>, vector<2x4xf32> -> vector<2x4xf32>
    %c0_10 = arith.constant 0 : index
    %c0_11 = arith.constant 0 : index
    %15 = vector.load %arg5[%c0_10, %c0_11] : memref<1x4xf32, #tpu.memory_space<vmem>>, vector<1x4xf32>
    %16 = vector.broadcast %15 : vector<1x4xf32> to vector<2x4xf32>
    %17 = arith.addf %14, %16 : vector<2x4xf32>
    %18 = arith.negf %17 : vector<2x4xf32>
    %19 = math.exp %18 : vector<2x4xf32>
    %cst_12 = arith.constant 1.000000e+00 : f32
    %20 = vector.broadcast %cst_12 : f32 to vector<2x4xf32>
    %21 = arith.addf %20, %19 : vector<2x4xf32>
    %22 = arith.divf %20, %21 : vector<2x4xf32>
    %c0_13 = arith.constant 0 : index
    %c0_14 = arith.constant 0 : index
    %23 = vector.load %arg7[%c0_13, %c0_14] : memref<2x4xf32, #tpu.memory_space<vmem>>, vector<2x4xf32>
    tpu.vector_store %arg7[%c0_13, %c0_14], %22 {strides = array<i32>} : memref<2x4xf32, #tpu.memory_space<vmem>>, vector<2x4xf32>,
    return
  }
  func.func @transform_0(%arg0: i32) -> (i32, i32) {
    %c0_i32 = arith.constant 0 : i32
    %c0_i32_0 = arith.constant 0 : i32
    return %arg0, %c0_i32 : i32, i32
  }
  func.func @transform_1(%arg0: i32) -> (i32, i32) {
    %c0_i32 = arith.constant 0 : i32
    %c0_i32_0 = arith.constant 0 : i32
    %c0_i32_1 = arith.constant 0 : i32
    return %c0_i32, %c0_i32_0 : i32, i32
  }
  func.func @transform_2(%arg0: i32) -> (i32, i32) {
    %c0_i32 = arith.constant 0 : i32
    %c0_i32_0 = arith.constant 0 : i32
    %c0_i32_1 = arith.constant 0 : i32
    return %c0_i32, %c0_i32_0 : i32, i32
  }
  func.func @transform_3(%arg0: i32) -> (i32, i32) {
    %c0_i32 = arith.constant 0 : i32
    %c0_i32_0 = arith.constant 0 : i32
    %c0_i32_1 = arith.constant 0 : i32
    return %c0_i32, %c0_i32_0 : i32, i32
  }
  func.func @transform_4(%arg0: i32) -> (i32, i32) {
    %c0_i32 = arith.constant 0 : i32
    %c0_i32_0 = arith.constant 0 : i32
    %c0_i32_1 = arith.constant 0 : i32
    return %c0_i32, %c0_i32_0 : i32, i32
  }
  func.func @transform_5(%arg0: i32) -> i32 {
    %c0_i32 = arith.constant 0 : i32
    %c0_i32_0 = arith.constant 0 : i32
    return %c0_i32 : i32
  }
  func.func @transform_6(%arg0: i32) -> (i32, i32) {
    %c0_i32 = arith.constant 0 : i32
    %c0_i32_0 = arith.constant 0 : i32
    return %arg0, %c0_i32 : i32, i32
  }
}

</mosaic_0001>

<bundles_post_ra>
// kernel: tpu_custom_call.1
= control target key start
LH: loop header
LB: loop body
LE: loop exit
PB: predicated region body
PF: predicated region fallthrough
CT: control target
= control target key end

     0   :  { %11 = vsyncpa [#allocation4], 0  ;;  %s526_s0 = inlined_call_operand.vmem [shape: f32[2,64], index: 0, kind: input, shape index: {}]   ;;  %s527_s1 = inlined_call_operand.vmem [shape: f32[64,16], index: 1, kind: input, shape index: {}]   ;;  %s528_s2 = inlined_call_operand.vmem [shape: f32[16,4], index: 2, kind: input, shape index: {}]   ;;  %s529_s3 = inlined_call_operand.vmem [shape: f32[4,4], index: 3, kind: input, shape index: {}]   ;;  %s530_s4 = inlined_call_operand.vmem [shape: f32[1,4], index: 4, kind: input, shape index: {}]   ;;  %s531_s5 = inlined_call_operand.vmem [shape: f32[2], index: 5, kind: input, shape index: {}]   ;;  %s532_s6 = inlined_call_operand.hbm [shape: f32[2,4], index: 6, kind: output, shape index: {}]  }
   0x1   :  { %12 = vsyncpa [#allocation3], 0  ;;  %s29_s23 = sshll.u32 %s531_s5, 4  ;;  %s30_s23 = int_to_ptr.vmem [resolvable:$true] %s29_s23 }
   0x2   :  { %s391_s24 = scalar_lea.vmem %s30_s23, 16  ;;  %p396_p1 = scmp.lt.s32.totalorder %s30_s23, %s30_s23 }
   0x3   :  { %p392_p0 = scmp.ne.s32.totalorder %s30_s23, %s391_s24  ;;  %p397_p2 = scmp.lt.s32.totalorder %s391_s24, %s391_s24 }
   0x5   :  { %p398_p3 = por %p397_p2, %p396_p1 }
   0x7   :  { %p399_p4 = pnand %p398_p3, %p392_p0 }
   0x9   :  { %402 = shalt.err (!%p399_p4)
}
   0xa   :  { %s429_s25 = smov [#allocation2]  }
   0xb   :  { %32 = dma.vmem_to_smem %s30_s23, 16, %s429_s25, [#allocation4]  }
   0xc   :  { %425 = dma.done.wait [#allocation4], 16  }
   0xd   :  { %426 = vsyncadd [#allocation4], 4294967280 }
   0xe   :  { %36 = sfence }
   0xf   :  { %v38_v0 = vld [vmem:[%s527_s1] sm:$0xff]  ;;  %v39_v1 = vld [vmem:[%s527_s1 + $0x8] sm:$0xff]  ;;  %v40_v2 = vld [vmem:[%s527_s1 + $0x10] sm:$0xff]  ;;  %v430_v3 = vmov 0.0|0.0   ;;  %vm431_vm0 = vmmov 0   ;;  %v432_v6 = vmov 0.0  }
  0x10   :  { %363 = vmatprep.subr.bf16.mxu0 %v430_v3  ;;  %v364_v4 = vpack.c.bf16 %v39_v1, %v38_v0  ;;  %v41_v5 = vld [vmem:[%s527_s1 + $0x18] sm:$0xff]  ;;  %348 = vmatprep.mubr.msk.f32.mxu0 %vm431_vm0, %v432_v6  ;;  %v42_v8 = vld [vmem:[%s527_s1 + $0x20] sm:$0xff]  ;;  %v43_v9 = vld [vmem:[%s527_s1 + $0x28] sm:$0xff]  ;;  %vm48_vm1 = vcmask 523264   ;;  %vm127_vm2 = vcmask 130048   ;;  %vm214_vm3 = vcmask 1043456  }
  0x11   :  { %375 = vmatprep.subr.bf16.mxu1 %v430_v3  ;;  %355 = vmatprep.mubr.msk.f32.mxu1 %vm431_vm0, %v432_v6  ;;  %v367_v7 = vpack.c.bf16 %v41_v5, %v40_v2  ;;  %v370_v10 = vpack.c.bf16 %v43_v9, %v42_v8  ;;  %v44_v11 = vld [vmem:[%s527_s1 + $0x30] sm:$0xff]  ;;  %v45_v12 = vld [vmem:[%s527_s1 + $0x38] sm:$0xff]  ;;  %v37_v14 = vld [vmem:[%s526_s0] sm:$0x3]  ;;  %s46_s1 = sld [smem:[#allocation2]]  ;;  %vm210_vm4 = vcmask 31744  }
  0x12   :  { %365 = vmatpush3.bf16.msra.mxu0 %v364_v4  ;;  %v373_v13 = vpack.c.bf16 %v45_v12, %v44_v11  ;;  %v123_v15 = vld [vmem:[%s528_s2] sm:$0xff]  ;;  %v124_v16 = vld [vmem:[%s528_s2 + $0x8] sm:$0xff]  ;;  %s312_s2 = sld [smem:[#allocation2 + $0x1]]  ;;  %vm294_vm5 = vcmask 25600  }
  0x13   :  { %366 = vmatprep.subr.bf16.mxu0 %v430_v3  ;;  %v376_v17 = vpack.c.bf16 %v124_v16, %v123_v15  ;;  %v202_v23 = vld [vmem:[%s529_s3] sm:$0xf]  ;;  %s433_s3 = smov [#allocation5]  }
  0x14   :  { %v314_v29 = vld [vmem:[%s530_s4] ss:$0 sm:$0xff]  ;;  %s302_s26 = sshll.u32 %s433_s3, 4  ;;  %s303_s26 = int_to_ptr.vmem [resolvable:$true] %s302_s26 }
  0x15   :  { %377 = vmatpush3.bf16.msra.mxu1 %v376_v17  ;;  %s403_s27 = scalar_lea.vmem %s303_s26, 32  ;;  %p408_p6 = scmp.lt.s32.totalorder %s303_s26, %s303_s26 }
  0x16   :  { %368 = vmatpush3.bf16.msra.mxu0 %v367_v7  ;;  %358 = vmatprep.subr.mxu1 %v432_v6  ;;  %p404_p5 = scmp.ne.s32.totalorder %s303_s26, %s403_s27  ;;  %p409_p7 = scmp.lt.s32.totalorder %s403_s27, %s403_s27 }
  0x17   :  { %369 = vmatprep.subr.bf16.mxu0 %v430_v3  ;;  %v47_v18 = vstv %s46_s1 }
  0x18   :  { %v126_v24 = vstv %s312_s2  ;;  %p410_p8 = por %p409_p7, %p408_p6 }
  0x1a   :  { %371 = vmatpush3.bf16.msra.mxu0 %v370_v10  ;;  %p411_p9 = pnand %p410_p8, %p404_p5 }
  0x1b   :  { %372 = vmatprep.subr.bf16.mxu0 %v430_v3 }
  0x1e   :  { %374 = vmatpush3.bf16.msra.mxu0 %v373_v13 }
  0x21   :  { %349 = vmatmul.mubr.msk.f32.vlgmr.msra.gmra.mrb[0].mxu0 %vm48_vm1, %v37_v14 }
  0xf4   :  { %v118_v19 = vpop.f32.mrb[0].mxu0 }
  0xf5   :  { %v119_v20 = vadd.f32 %v118_v19, %v47_v18  ;;  %v350_v21 = vpop.f32.mrb[1].mxu0 }
  0xf7   :  { %383 = vtanh.f32 %v119_v20 }
 0x101   :  { %v384_v22 = vpop.eup %383 }
 0x102   :  { %356 = vmatmul.mubr.msk.f32.vlgmr.msra.gmra.mrb[0].mxu1 %vm127_vm2, %v384_v22 }
 0x103   :  { %360 = vmatprep.mubr.msk.f32.mxu1 %vm431_vm0, %v432_v6  ;;  %359 = vmatpush3.msk.msra.mxu1 %vm214_vm3, %v202_v23 }
 0x1d5   :  { %v197_v25 = vpop.f32.mrb[0].mxu1 }
 0x1d6   :  { %v198_v26 = vadd.f32 %v197_v25, %v126_v24  ;;  %v357_v27 = vpop.f32.mrb[1].mxu1 }
 0x1d8   :  { %385 = vtanh.f32 %v198_v26 }
 0x1e2   :  { %v386_v28 = vpop.eup %385 }
 0x1e3   :  { %361 = vmatmul.mubr.msk.f32.vlgmr.msra.gmra.mrb[2].mxu1 %vm210_vm4, %v386_v28 }
 0x2b6   :  { %v284_v30 = vpop.f32.mrb[2].mxu1 }
 0x2b7   :  { %v285_v31 = vadd.f32 %v314_v29, %v284_v30  ;;  %v362_v32 = vpop.f32.mrb[3].mxu1 }
 0x2b9   :  { %v317_v33 = vmul.f32 -1.442695, %v285_v31 }
 0x2bb   :  { %387 = vpow2.f32 %v317_v33 }
 0x2c5   :  { %v388_v34 = vpop.eup %387 }
 0x2c6   :  { %v291_v35 = vadd.f32 1.0, %v388_v34 }
 0x2c8   :  { %389 = vrcp.f32 %v291_v35 }
 0x2d2   :  { %v390_v36 = vpop.eup %389 }
 0x2d3   :  { %295 = vst.msk [vmem:[#allocation5] sm:$0x3] %vm294_vm5, %v390_v36 }
 0x2d4   :  { %414 = shalt.err (!%p411_p9)
}
 0x2d5   :  { %s415_s29 = scalar_lea.hbm %s532_s6, 32 }
 0x2d6   :  { %p416_p10 = scmp.ne.s32.totalorder %s532_s6, %s415_s29  ;;  %p419_p11 = scmp.lt.u32.totalorder %s415_s29, %s532_s6 }
 0x2d8   :  { %p421_p12 = pnand %p419_p11, %p416_p10 }
 0x2da   :  { %424 = shalt.err (!%p421_p12)
}
 0x2db   :  { %305 = dma.vmem_to_hbm [thread:$0]  %s303_s26, 32, %s532_s6, [#allocation3]  }
 0x2dc   :  { %427 = dma.done.wait [#allocation3], 32  }
 0x2dd   :  { %428 = vsyncadd [#allocation3], 4294967264 }
 0x2de   :  { %309 = vsyncpa [#allocation3], 1 }
 0x2df   :  { %310 = vsyncpa [#allocation4], 1 }

</bundles_post_ra>
